<compile_context>
chip_gen: v6e
topology: v6e:2x2x1
jax: 0.10.0
libtpu: 0.0.40
codegen_flags: <defaults>
</compile_context>

<pallas_src>
import functools

import jax
import jax.numpy as jnp
from jax import lax
from jax.experimental import pallas as pl
from jax.experimental.pallas import tpu as pltpu

# -------- "config" mirroring cfg fields the forward needs -------------------
N_CLASSES = 8
IN_CHANS = 1
BACKBONE_OUT = 32     # backbone.num_features stand-in
GEM_P = 3.0           # GeM default p
GEM_EPS = 1e-6        # GeM default eps

MAX_BLOCK = 32768     # spatial positions per grid step (lanes), multiple of 128


def _round_up(x, m):
    return (x + m - 1) // m * m


# ----------------------------- Pallas kernel --------------------------------
def _fused_conv_gem_head_kernel(taps_ref, wc_ref, bc_ref, wh_ref, bh_ref,
                                out_ref, acc_ref, *, n_valid, n_cls, inv_count):
    """Grid = (batch, spatial_block).  Per step:

    conv3x3/stride2/pad1 (stand-in backbone) as one (C,9)@(9,BLK) MXU matmul
    over pre-gathered tap planes, + bias + ReLU, then GeM clamp/cube accumulated
    into a wide (C, BLK) f32 scratch.  On the last spatial block: single lane
    reduce -> mean^(1/3) -> Linear head -> sigmoid -> one combined output slab.
    """
    s = pl.program_id(1)

    @pl.when(s == 0)
    def _init():
        acc_ref[...] = jnp.zeros_like(acc_ref)

    # conv block: (C, 9) @ (9, BLK) -> lane-dense (C, BLK), f32 accumulation.
    feat = jnp.dot(wc_ref[...], taps_ref[...],
                   preferred_element_type=jnp.float32)
    feat = jnp.maximum(feat + bc_ref[...], 0.0)          # bias + ReLU
    x = jnp.maximum(feat, GEM_EPS)                       # GeM clamp(min=eps)
    cub = x * x * x                                      # x ** p, p == 3 (VPU)

    # zero out the spatial zero-padding columns (only the last block is partial;
    # padded taps are 0 but bias+ReLU would otherwise pollute the GeM sum).
    blk = acc_ref.shape[1]
    col = lax.broadcasted_iota(jnp.int32, (1, blk), 1) + s * blk
    acc_ref[...] += jnp.where(col < n_valid, cub, 0.0)   # VPU add, no XLU here

    @pl.when(s == pl.num_programs(1) - 1)
    def _finalize():
        # single cross-lane reduce per batch element
        pooled = jnp.sum(acc_ref[...], axis=1, keepdims=True) * inv_count  # (C,1)
        # mean^(1/p); pooled >= eps**p > 0 so log is safe
        pooled = jnp.exp(jnp.log(pooled) * (1.0 / GEM_P))
        # Linear head as a tiny VPU broadcast-sum: (C,1)*(C,ncls) summed over C.
        logits = jnp.sum(pooled * wh_ref[...], axis=0, keepdims=True) + bh_ref[...]
        out_ref[:, 0:n_cls] = logits
        out_ref[:, n_cls:2 * n_cls] = 1.0 / (1.0 + jnp.exp(-logits))  # sigmoid


# ------------------------------ JAX glue -------------------------------------
def init_params(key):
    k1, k2, k3, k4 = jax.random.split(key, 4)
    conv_w = 0.1 * jax.random.normal(k1, (BACKBONE_OUT, IN_CHANS, 3, 3), jnp.float32)
    conv_b = 0.01 * jax.random.normal(k2, (BACKBONE_OUT,), jnp.float32)
    head_w = 0.1 * jax.random.normal(k3, (N_CLASSES, BACKBONE_OUT), jnp.float32)
    head_b = 0.01 * jax.random.normal(k4, (N_CLASSES,), jnp.float32)
    return conv_w, conv_b, head_w, head_b


@jax.jit
def net_forward(spec, target, weight, params):
    conv_w, conv_b, head_w, head_b = params
    c_out = conv_w.shape[0]
    n_cls = head_w.shape[0]
    bs, F, T = spec.shape

    # conv3x3/stride2/pad1 output extents, computed in the *native* (freq, time)
    # layout.  The eval-path permute(0,2,1) is folded into the conv weights
    # (kh/kw swap) instead of transposing the input in HBM; GeM pools over all
    # H*W positions, so the pooled features / logits are identical.
    Hs = (F - 1) // 2 + 1
    Ws = (T - 1) // 2 + 1
    n_pos = Hs * Ws

    blk = min(MAX_BLOCK, _round_up(n_pos, 128))
    n_pad = _round_up(n_pos, blk)
    n_blk = n_pad // blk

    # 9 stride-2 tap planes at output resolution (one fused XLA gather pass over
    # `spec`), flattened to a single lane-dense spatial axis, zero-padded to a
    # multiple of the block size, cast to bf16 (~1.1x the f32 input bytes).
    xpad = jnp.pad(spec, ((0, 0), (1, 2 * Hs - F), (1, 2 * Ws - T)))
    taps = jnp.stack(
        [xpad[:, dh:dh + 2 * Hs:2, dw:dw + 2 * Ws:2]
         for dh in range(3) for dw in range(3)],
        axis=1)                                          # (bs, 9, Hs, Ws)
    taps = taps.reshape(bs, 9, n_pos)
    taps = jnp.pad(taps, ((0, 0), (0, 0), (0, n_pad - n_pos)))
    taps = taps.astype(jnp.bfloat16)

    # swap the 3x3 taps' (kh, kw) so the conv runs on the untransposed spec;
    # tap order k = 3*dh + dw matches the wrapper loop above.
    wc = jnp.transpose(conv_w[:, 0], (0, 2, 1)).reshape(c_out, 9).astype(jnp.bfloat16)
    bc = conv_b.reshape(c_out, 1).astype(jnp.float32)
    wh = head_w.T.astype(jnp.float32)                    # (C_out, n_classes)
    bh = head_b.reshape(1, n_cls).astype(jnp.float32)

    kernel = functools.partial(
        _fused_conv_gem_head_kernel,
        n_valid=n_pos, n_cls=n_cls, inv_count=1.0 / float(n_pos))

    flops = int(bs * n_pos * (2 * 9 * c_out + 6 * c_out)
                + bs * c_out * n_pad              # final lane reduce
                + bs * 2 * c_out * n_cls)
    transcendentals = int(bs * (2 * c_out + n_cls))
    bytes_accessed = int(bs * 9 * n_pad * 2              # bf16 tap planes
                         + (9 * 2 + 4) * c_out           # conv weights/bias
                         + 4 * (c_out + 1) * n_cls       # head weights/bias
                         + bs * 2 * n_cls * 4)           # combined output slab

    out = pl.pallas_call(
        kernel,
        out_shape=jax.ShapeDtypeStruct((bs, 1, 2 * n_cls), jnp.float32),
        grid=(bs, n_blk),
        in_specs=[
            pl.BlockSpec((None, 9, blk), lambda b, s: (b, 0, s)),
            pl.BlockSpec((c_out, 9), lambda b, s: (0, 0)),
            pl.BlockSpec((c_out, 1), lambda b, s: (0, 0)),
            pl.BlockSpec((c_out, n_cls), lambda b, s: (0, 0)),
            pl.BlockSpec((1, n_cls), lambda b, s: (0, 0)),
        ],
        out_specs=pl.BlockSpec((None, 1, 2 * n_cls), lambda b, s: (b, 0, 0)),
        scratch_shapes=[pltpu.VMEM((c_out, blk), jnp.float32)],
        compiler_params=pltpu.CompilerParams(
            dimension_semantics=("parallel", "arbitrary"),   # megacore over batch
            vmem_limit_bytes=32 * 1024 * 1024,               # safe on v5e/v6e/v7x
        ),
        cost_estimate=pl.CostEstimate(
            flops=flops,
            transcendentals=transcendentals,
            bytes_accessed=bytes_accessed,
        ),
    )(taps, wc, bc, wh, bh)

    out = out.reshape(bs, 2 * n_cls)
    logits_raw = out[:, :n_cls]
    probs = out[:, n_cls:]

    return {
        "logits": probs,          # logits.sigmoid(), as in the PyTorch module
        "logits_raw": logits_raw,
        "weight": weight,
        "target": target,
    }


# --------------------------- pure-JAX reference ------------------------------
def reference_forward(spec, params, cast_bf16=True):
    conv_w, conv_b, head_w, head_b = params
    if cast_bf16:
        # the kernel feeds the MXU bf16 inputs/weights (f32 accumulation);
        # round the reference inputs the same way so the check is tight.
        spec = spec.astype(jnp.bfloat16).astype(jnp.float32)
        conv_w = conv_w.astype(jnp.bfloat16).astype(jnp.float32)
    x = jnp.transpose(spec, (0, 2, 1))[:, None, :, :]          # NCHW
    feat = lax.conv_general_dilated(
        x, conv_w, window_strides=(2, 2), padding=((1, 1), (1, 1)),
        dimension_numbers=("NCHW", "OIHW", "NCHW"),
        precision=lax.Precision.HIGHEST)
    feat = jnp.maximum(feat + conv_b[None, :, None, None], 0.0)
    clamped = jnp.maximum(feat, GEM_EPS)
    pooled = jnp.mean(clamped ** GEM_P, axis=(2, 3)) ** (1.0 / GEM_P)
    logits = jnp.dot(pooled, head_w.T, precision=lax.Precision.HIGHEST) + head_b
    return logits, jax.nn.sigmoid(logits)


if __name__ == "__main__":
    key = jax.random.PRNGKey(0)
    kp, kx, ky = jax.random.split(key, 3)
    params = init_params(kp)

    bs, freq, time = 2, 16, 16
    spec = jax.random.uniform(kx, (bs, freq, time), jnp.float32)
    target = (jax.random.uniform(ky, (bs, N_CLASSES)) > 0.5).astype(jnp.float32)
    weight = jnp.ones((bs,), jnp.float32)

    out = net_forward(spec, target, weight, params)
    jax.block_until_ready(out)

    assert out["logits"].shape == (bs, N_CLASSES)
    assert out["logits_raw"].shape == (bs, N_CLASSES)

    ref_logits, ref_probs = reference_forward(spec, params)
    assert jnp.allclose(out["logits_raw"], ref_logits, atol=2e-3, rtol=2e-3), (
        float(jnp.max(jnp.abs(out["logits_raw"] - ref_logits))))
    assert jnp.allclose(out["logits"], ref_probs, atol=2e-3, rtol=2e-3)

    print("KERNEL_OK")
</pallas_src>

<mosaic_0001>
module attributes {stable_mosaic.version = 11 : i64} {
  func.func @_fused_conv_gem_head_kernel(%arg0: i32, %arg1: i32, %arg2: memref<1x9x128xbf16, #tpu.memory_space<vmem>>, %arg3: memref<32x9xbf16, #tpu.memory_space<vmem>>, %arg4: memref<32x1xf32, #tpu.memory_space<vmem>>, %arg5: memref<32x8xf32, #tpu.memory_space<vmem>>, %arg6: memref<1x8xf32, #tpu.memory_space<vmem>>, %arg7: memref<1x1x16xf32, #tpu.memory_space<vmem>>, %arg8: memref<32x128xf32, #tpu.memory_space<vmem>>) attributes {dimension_semantics = [#tpu.dimension_semantics<parallel>, #tpu.dimension_semantics<arbitrary>], iteration_bounds = array<i64: 2, 1>, scalar_prefetch = 0 : i64, scratch_operands = 1 : i64, tpu.core_type = #tpu.core_type<tc>, window_params = [{transform_indices = @transform_0, window_bounds = array<i64: 1, 9, 128>}, {pipeline_mode = #tpu.pipeline_mode<synchronous>, transform_indices = @transform_1, window_bounds = array<i64: 32, 9>}, {pipeline_mode = #tpu.pipeline_mode<synchronous>, transform_indices = @transform_2, window_bounds = array<i64: 32, 1>}, {pipeline_mode = #tpu.pipeline_mode<synchronous>, transform_indices = @transform_3, window_bounds = array<i64: 32, 8>}, {pipeline_mode = #tpu.pipeline_mode<synchronous>, transform_indices = @transform_4, window_bounds = array<i64: 1, 8>}, {transform_indices = @transform_5, window_bounds = array<i64: 1, 1, 16>}]} {
    %c0_i32 = arith.constant 0 : i32
    %0 = arith.cmpi eq, %arg1, %c0_i32 : i32
    %1 = arith.extui %0 : i1 to i32
    %c0_i32_0 = arith.constant 0 : i32
    %2 = arith.cmpi ne, %1, %c0_i32_0 : i32
    scf.if %2 {
      %cst_16 = arith.constant 0.000000e+00 : f32
      %32 = vector.broadcast %cst_16 : f32 to vector<32x128xf32>
      %c0_17 = arith.constant 0 : index
      %c0_18 = arith.constant 0 : index
      %33 = vector.load %arg8[%c0_17, %c0_18] : memref<32x128xf32, #tpu.memory_space<vmem>>, vector<32x128xf32>
      tpu.vector_store %arg8[%c0_17, %c0_18], %32 {strides = array<i32>} : memref<32x128xf32, #tpu.memory_space<vmem>>, vector<32x128xf32>,
    } else {
    }
    %c0 = arith.constant 0 : index
    %c0_1 = arith.constant 0 : index
    %3 = vector.load %arg3[%c0, %c0_1] : memref<32x9xbf16, #tpu.memory_space<vmem>>, vector<32x9xbf16>
    %c0_2 = arith.constant 0 : index
    %c0_3 = arith.constant 0 : index
    %c0_4 = arith.constant 0 : index
    %4 = vector.load %arg2[%c0_2, %c0_3, %c0_4] : memref<1x9x128xbf16, #tpu.memory_space<vmem>>, vector<1x9x128xbf16>
    %5 = vector.shape_cast %4 : vector<1x9x128xbf16> to vector<9x128xbf16>
    %cst = arith.constant dense<0.000000e+00> : vector<32x128xf32>
    %6 = tpu.matmul %3, %5, %cst {dimension_numbers = #tpu.dot_dimension_numbers<[1], [0], [0], [1], [0, 0, 1, 1], [], []>} : vector<32x9xbf16>, vector<9x128xbf16>, vector<32x128xf32> -> vector<32x128xf32>
    %c0_5 = arith.constant 0 : index
    %c0_6 = arith.constant 0 : index
    %7 = vector.load %arg4[%c0_5, %c0_6] : memref<32x1xf32, #tpu.memory_space<vmem>>, vector<32x1xf32>
    %8 = vector.broadcast %7 : vector<32x1xf32> to vector<32x128xf32>
    %9 = arith.addf %6, %8 : vector<32x128xf32>
    %cst_7 = arith.constant 0.000000e+00 : f32
    %10 = vector.broadcast %cst_7 : f32 to vector<32x128xf32>
    %11 = arith.maximumf %9, %10 : vector<32x128xf32>
    %cst_8 = arith.constant 9.99999997E-7 : f32
    %12 = vector.broadcast %cst_8 : f32 to vector<32x128xf32>
    %13 = arith.maximumf %11, %12 : vector<32x128xf32>
    %14 = arith.mulf %13, %13 : vector<32x128xf32>
    %15 = arith.mulf %14, %13 : vector<32x128xf32>
    %16 = tpu.iota {dimensions = array<i32: 1>} : vector<1x128xi32>
    %c128_i32 = arith.constant 128 : i32
    %17 = arith.muli %arg1, %c128_i32 : i32
    %18 = vector.broadcast %17 : i32 to vector<1x128xi32>
    %19 = arith.addi %16, %18 : vector<1x128xi32>
    %c0_9 = arith.constant 0 : index
    %c0_10 = arith.constant 0 : index
    %20 = vector.load %arg8[%c0_9, %c0_10] : memref<32x128xf32, #tpu.memory_space<vmem>>, vector<32x128xf32>
    %c64_i32 = arith.constant 64 : i32
    %21 = vector.broadcast %c64_i32 : i32 to vector<1x128xi32>
    %22 = arith.cmpi slt, %19, %21 : vector<1x128xi32>
    %cst_11 = arith.constant 0.000000e+00 : f32
    %23 = vector.shape_cast %22 : vector<1x128xi1> to vector<1x128xi1>
    %24 = vector.broadcast %23 : vector<1x128xi1> to vector<32x128xi1>
    %25 = vector.broadcast %cst_11 : f32 to vector<32x128xf32>
    %26 = arith.select %24, %15, %25 : vector<32x128xi1>, vector<32x128xf32>
    %27 = arith.addf %20, %26 : vector<32x128xf32>
    %c0_12 = arith.constant 0 : index
    %c0_13 = arith.constant 0 : index
    %28 = vector.load %arg8[%c0_12, %c0_13] : memref<32x128xf32, #tpu.memory_space<vmem>>, vector<32x128xf32>
    tpu.vector_store %arg8[%c0_12, %c0_13], %27 {strides = array<i32>} : memref<32x128xf32, #tpu.memory_space<vmem>>, vector<32x128xf32>,
    %c0_i32_14 = arith.constant 0 : i32
    %29 = arith.cmpi eq, %arg1, %c0_i32_14 : i32
    %30 = arith.extui %29 : i1 to i32
    %c0_i32_15 = arith.constant 0 : i32
    %31 = arith.cmpi ne, %30, %c0_i32_15 : i32
    scf.if %31 {
      %c0_16 = arith.constant 0 : index
      %c0_17 = arith.constant 0 : index
      %32 = vector.load %arg8[%c0_16, %c0_17] : memref<32x128xf32, #tpu.memory_space<vmem>>, vector<32x128xf32>
      %cst_18 = arith.constant dense<0.000000e+00> : vector<32xf32>
      %33 = vector.multi_reduction <add>, %32, %cst_18 [1] : vector<32x128xf32> to vector<32xf32>
      %34 = vector.shape_cast %33 : vector<32xf32> to vector<32x1xf32>
      %cst_19 = arith.constant 1.562500e-02 : f32
      %35 = vector.broadcast %cst_19 : f32 to vector<32x1xf32>
      %36 = arith.mulf %34, %35 : vector<32x1xf32>
      %37 = math.log %36 : vector<32x1xf32>
      %cst_20 = arith.constant 0.333333343 : f32
      %38 = vector.broadcast %cst_20 : f32 to vector<32x1xf32>
      %39 = arith.mulf %37, %38 : vector<32x1xf32>
      %40 = math.exp %39 : vector<32x1xf32>
      %c0_21 = arith.constant 0 : index
      %c0_22 = arith.constant 0 : index
      %41 = vector.load %arg5[%c0_21, %c0_22] : memref<32x8xf32, #tpu.memory_space<vmem>>, vector<32x8xf32>
      %42 = vector.broadcast %40 : vector<32x1xf32> to vector<32x8xf32>
      %43 = arith.mulf %42, %41 : vector<32x8xf32>
      %cst_23 = arith.constant dense<0.000000e+00> : vector<8xf32>
      %44 = vector.multi_reduction <add>, %43, %cst_23 [0] : vector<32x8xf32> to vector<8xf32>
      %45 = vector.shape_cast %44 : vector<8xf32> to vector<1x8xf32>
      %c0_24 = arith.constant 0 : index
      %c0_25 = arith.constant 0 : index
      %46 = vector.load %arg6[%c0_24, %c0_25] : memref<1x8xf32, #tpu.memory_space<vmem>>, vector<1x8xf32>
      %47 = arith.addf %45, %46 : vector<1x8xf32>
      %c0_26 = arith.constant 0 : index
      %c0_27 = arith.constant 0 : index
      %c0_28 = arith.constant 0 : index
      %48 = vector.load %arg7[%c0_26, %c0_27, %c0_28] : memref<1x1x16xf32, #tpu.memory_space<vmem>>, vector<1x1x8xf32>
      %49 = vector.shape_cast %48 : vector<1x1x8xf32> to vector<1x8xf32>
      %50 = vector.shape_cast %47 : vector<1x8xf32> to vector<1x1x8xf32>
      tpu.vector_store %arg7[%c0_26, %c0_27, %c0_28], %50 {strides = array<i32>} : memref<1x1x16xf32, #tpu.memory_space<vmem>>, vector<1x1x8xf32>,
      %cst_29 = arith.constant 0.000000e+00 : f32
      %51 = vector.broadcast %cst_29 : f32 to vector<1x8xf32>
      %52 = arith.subf %51, %47 : vector<1x8xf32>
      %53 = math.exp %52 : vector<1x8xf32>
      %cst_30 = arith.constant 1.000000e+00 : f32
      %54 = vector.broadcast %cst_30 : f32 to vector<1x8xf32>
      %55 = arith.addf %54, %53 : vector<1x8xf32>
      %cst_31 = arith.constant 1.000000e+00 : f32
      %56 = vector.broadcast %cst_31 : f32 to vector<1x8xf32>
      %57 = arith.divf %56, %55 : vector<1x8xf32>
      %c0_32 = arith.constant 0 : index
      %c0_33 = arith.constant 0 : index
      %c8 = arith.constant 8 : index
      %58 = vector.load %arg7[%c0_32, %c0_33, %c8] : memref<1x1x16xf32, #tpu.memory_space<vmem>>, vector<1x1x8xf32>
      %59 = vector.shape_cast %58 : vector<1x1x8xf32> to vector<1x8xf32>
      %60 = vector.shape_cast %57 : vector<1x8xf32> to vector<1x1x8xf32>
      tpu.vector_store %arg7[%c0_32, %c0_33, %c8], %60 {strides = array<i32>} : memref<1x1x16xf32, #tpu.memory_space<vmem>>, vector<1x1x8xf32>,
    } else {
    }
    return
  }
  func.func @transform_0(%arg0: i32, %arg1: i32) -> (i32, i32, i32) {
    %c0_i32 = arith.constant 0 : i32
    %c0_i32_0 = arith.constant 0 : i32
    return %arg0, %c0_i32, %arg1 : i32, i32, i32
  }
  func.func @transform_1(%arg0: i32, %arg1: i32) -> (i32, i32) {
    %c0_i32 = arith.constant 0 : i32
    %c0_i32_0 = arith.constant 0 : i32
    %c0_i32_1 = arith.constant 0 : i32
    return %c0_i32, %c0_i32_0 : i32, i32
  }
  func.func @transform_2(%arg0: i32, %arg1: i32) -> (i32, i32) {
    %c0_i32 = arith.constant 0 : i32
    %c0_i32_0 = arith.constant 0 : i32
    %c0_i32_1 = arith.constant 0 : i32
    return %c0_i32, %c0_i32_0 : i32, i32
  }
  func.func @transform_3(%arg0: i32, %arg1: i32) -> (i32, i32) {
    %c0_i32 = arith.constant 0 : i32
    %c0_i32_0 = arith.constant 0 : i32
    %c0_i32_1 = arith.constant 0 : i32
    return %c0_i32, %c0_i32_0 : i32, i32
  }
  func.func @transform_4(%arg0: i32, %arg1: i32) -> (i32, i32) {
    %c0_i32 = arith.constant 0 : i32
    %c0_i32_0 = arith.constant 0 : i32
    %c0_i32_1 = arith.constant 0 : i32
    return %c0_i32, %c0_i32_0 : i32, i32
  }
  func.func @transform_5(%arg0: i32, %arg1: i32) -> (i32, i32, i32) {
    %c0_i32 = arith.constant 0 : i32
    %c0_i32_0 = arith.constant 0 : i32
    %c0_i32_1 = arith.constant 0 : i32
    return %arg0, %c0_i32, %c0_i32_0 : i32, i32, i32
  }
}

</mosaic_0001>

<bundles_post_ra>
// kernel: net_forward.1
= control target key start
LH: loop header
LB: loop body
LE: loop exit
PB: predicated region body
PF: predicated region fallthrough
CT: control target
= control target key end

     0   :  { %s672_s18 = smov 0   ;;  %s674_s19 = smov 0   ;;  %s744_s0 = inlined_call_operand.vmem [shape: bf16[2,9,128], index: 0, kind: input, shape index: {}]   ;;  %s745_s1 = inlined_call_operand.vmem [shape: bf16[32,9], index: 1, kind: input, shape index: {}]   ;;  %s746_s2 = inlined_call_operand.vmem [shape: f32[32,1], index: 2, kind: input, shape index: {}]   ;;  %s747_s3 = inlined_call_operand.vmem [shape: f32[32,8], index: 3, kind: input, shape index: {}]   ;;  %s748_s4 = inlined_call_operand.vmem [shape: f32[1,8], index: 4, kind: input, shape index: {}]   ;;  %s749_s5 = inlined_call_operand.vmem [shape: f32[2,1,16], index: 5, kind: output, shape index: {}]  }
   0x1   :  { %s676_s20 = smov 0  }
   0x2 LB: > { %s27_s21 = sadd.s32 1, %s633_s19  ;;  %p543_p0 = scmp.ge.s32.totalorder %s637_s20, 1  ;;  %s637_s20 = sphi %s676_s20, %s15_s20   ;;  %s633_s19 = sphi %s674_s19, %s751_s19   ;;  %s629_s18 = sphi %s672_s18, %s750_s18  }
   0x3   : > { %p29_p1 = scmp.ge.s32.totalorder %s27_s21, 2  ;;  %p204_p2 = scmp.lt.s32.totalorder %s637_s20, 3 }
   0x5   : > { %s753_s21 = smov (%p29_p1, %s27_s21), 0  ;;  %p205_p3 = pnand %p543_p0, %p204_p2 }
   0x6   : > { %p233_p4 = scmp.lt.s32.totalorder (!%p205_p3), %s629_s18, 1  ;;  %s641_s30 = smov (!%p205_p3), 8  }
   0x7   : > { %208 = sbr.rel (%p205_p3) target bundleno = 580 (0x244), region = 40 }
   0xc   : > { %vm305_vm0 = vcmask 1043456   ;;  %vm306_vm1 = vcmask 1044480   ;;  %v593_v0 = vld [vmem:[%s745_s1] sm:$0xff]   ;;  %vm298_vm2 = vcmask 72704   ;;  %s755_s18 = smov (!%p233_p4, %s629_s18), 1  ;;  %v639_v1 = vmov 65535  }
   0xd   : > { %v307_v2 = vsel %vm305_vm0, 4294967295, %v639_v1  ;;  %559 = vmatprep.mubr.msk.bf16.mxu0 %vm298_vm2, %v593_v0  ;;  %v259_v3 = vld [vmem:[%s746_s2] sm:$0xff]  ;;  %v261_v4 = vld [vmem:[%s746_s2 + $0x10] sm:$0xff]  ;;  %s553_s28 = sshll.u32 %s755_s18, 3  ;;  %v640_v5 = vmov 0   ;;  %v260_v7 = vld [vmem:[%s746_s2 + $0x8] sm:$0xff]  ;;  %v377_v21 = vlaneseq  ;;  %s243_s29 = scalar_lea.vmem %s749_s5, %s755_s18 }
   0xe   : > { %590 = vset.pattern.permute.xlu0 %v640_v5  ;;  %591 = vset.pattern.permute.xlu1 %v640_v5  ;;  %s240_s6 = scalar_lea.vmem %s744_s0, %s553_s28  ;;  %v308_v6 = vsel %vm306_vm1, %v307_v2, 0  ;;  %v262_v8 = vld [vmem:[%s746_s2 + $0x18] sm:$0xff]  ;;  %v594_v11 = vld [vmem:[%s745_s1 + $0x8] sm:$0xff]   ;;  %vm448_vm4 = vcmask 64512   ;;  %vm464_vm5 = vcmask 57344   ;;  %vm476_vm6 = vcmask 122944  }
   0xf   : > { %265 = vperm.xlu0 %590, %v259_v3   ;;  %275 = vperm.xlu1 %591, %v261_v4   ;;  %v592_v9 = vld [vmem:[%s240_s6] sm:$0x1f]   ;;  %v378_v30 = vand.u32 127, %v377_v21 }
  0x10   : > { %v310_v10 = vand.u32 %v592_v9, %v308_v6 }
  0x11   : > { %vm386_vm3 = vcmp.lt.s32.totalorder %v378_v30, 64  ;;  %v462_v30 = vld [vmem:[%s748_s4] sm:$0x1] }
  0x12   : > { %557 = vmatprep.subr.bf16.mxu0 %v310_v10 }
  0x13   : > { %270 = vperm.xlu0 %590, %v260_v7   ;;  %280 = vperm.xlu1 %591, %v262_v8   ;;  %v440_v7 = vld [vmem:[%s747_s3] sm:$0xff]  ;;  %v441_v8 = vld [vmem:[%s747_s3 + $0x8] sm:$0xff] }
  0x14   : > { %558 = vmatpush3.bf16.msra.mxu0 %v310_v10  ;;  %v442_v10 = vld [vmem:[%s747_s3 + $0x10] sm:$0xff] }
  0x17   : > { %560 = vmatmul.mubr.msk.bf16.vlgmr.msra.gmra.mxu0 %vm298_vm2, %v594_v11 }
  0x8a   : > { %v276_v12 = vpop.permute.xlu1 %275  ;;  %v266_v13 = vpop.permute.xlu0 %265 }
  0x8e   : > { %v281_v17 = vpop.permute.xlu1 %280  ;;  %v271_v25 = vpop.permute.xlu0 %270 }
  0xd7   : > { %v561_v14 = vpop.f32.mrf.mxu0 }
  0xd8   : > { %v355_v15 = vadd.f32 %v561_v14, %v276_v12 }
  0xd9   : > { %v346_v16 = vpop.f32.mrf.mxu0 }
  0xda   : > { %v363_v18 = vmax.f32 %v355_v15, 0.0  ;;  %v347_v19 = vadd.f32 %v346_v16, %v266_v13  ;;  %v443_v15 = vld [vmem:[%s747_s3 + $0x18] sm:$0xff] }
  0xdb   : > { %v562_v20 = vpop.f32.mrf.mxu0 }
  0xdc   : > { %v367_v22 = vmax.f32 %v363_v18, 1e-06  ;;  %v361_v23 = vmax.f32 %v347_v19, 0.0  ;;  %v358_v24 = vadd.f32 %v562_v20, %v281_v17 }
  0xdd   : > { %v349_v26 = vpop.f32.mrf.mxu0 }
  0xde   : > { %v365_v27 = vmax.f32 %v361_v23, 1e-06  ;;  %v364_v28 = vmax.f32 %v358_v24, 0.0  ;;  %v350_v29 = vadd.f32 %v349_v26, %v271_v25  ;;  %v371_v31 = vmul.f32 %v367_v22, %v367_v22 }
  0xe0   : > { %v369_v32 = vmul.f32 %v365_v27, %v365_v27  ;;  %v368_v33 = vmax.f32 %v364_v28, 1e-06  ;;  %v362_v34 = vmax.f32 %v350_v29, 0.0  ;;  %v375_v40 = vmul.f32 %v371_v31, %v367_v22 }
  0xe2   : > { %v366_v35 = vmax.f32 %v362_v34, 1e-06  ;;  %v373_v36 = vmul.f32 %v369_v32, %v365_v27  ;;  %v372_v37 = vmul.f32 %v368_v33, %v368_v33  ;;  %v391_v43 = vsel %vm386_vm3, %v375_v40, 0.0 }
  0xe4   : > { %v370_v38 = vmul.f32 %v366_v35, %v366_v35  ;;  %v389_v39 = vsel %vm386_vm3, %v373_v36, 0.0  ;;  %v376_v44 = vmul.f32 %v372_v37, %v368_v33 }
  0xe5   : > { %408 = vadd.xlane.f32.xlu0 %v389_v39 }
  0xe6   : > { %v374_v41 = vmul.f32 %v370_v38, %v366_v35  ;;  %v392_v45 = vsel %vm386_vm3, %v376_v44, 0.0 }
  0xe8   : > { %v390_v42 = vsel %vm386_vm3, %v374_v41, 0.0 }
  0xe9   : > { %410 = vadd.xlane.f32.xlu1 %v390_v42  ;;  %412 = vadd.xlane.f32.xlu0 %v391_v43 }
  0xed   : > { %414 = vadd.xlane.f32.xlu0 %v392_v45 }
 0x16e   : > { %v409_v46 = vpop.xlane.xlu0 %408 }
 0x16f   : > { %v416_v47 = vmul.f32 0.015625, %v409_v46 }
 0x171   : > { %595 = vlog2.f32 %v416_v47 }
 0x172   : > { %v411_v48 = vpop.xlane.xlu1 %410  ;;  %v413_v49 = vpop.xlane.xlu0 %412 }
 0x173   : > { %v417_v50 = vmul.f32 0.015625, %v411_v48  ;;  %v418_v51 = vmul.f32 0.015625, %v413_v49 }
 0x175   : > { %597 = vlog2.f32 %v417_v50 }
 0x176   : > { %599 = vlog2.f32 %v418_v51  ;;  %v415_v52 = vpop.xlane.xlu0 %414 }
 0x177   : > { %v419_v53 = vmul.f32 0.015625, %v415_v52 }
 0x179   : > { %601 = vlog2.f32 %v419_v53 }
 0x17e   : > { %v596_v54 = vpop.eup %595 }
 0x17f   : > { %v421_v55 = vmul.f32 0.6931472, %v596_v54 }
 0x181   : > { %v428_v56 = vmul.f32 0.33333334, %v421_v55 }
 0x182   : > { %v598_v57 = vpop.eup %597 }
 0x183   : > { %v600_v58 = vpop.eup %599  ;;  %v432_v59 = vmul.f32 1.442695, %v428_v56  ;;  %v423_v60 = vmul.f32 0.6931472, %v598_v57 }
 0x184   : > { %v425_v61 = vmul.f32 0.6931472, %v600_v58 }
 0x185   : > { %603 = vpow2.f32 %v432_v59  ;;  %v429_v62 = vmul.f32 0.33333334, %v423_v60 }
 0x186   : > { %v602_v63 = vpop.eup %601  ;;  %v430_v0 = vmul.f32 0.33333334, %v425_v61 }
 0x187   : > { %v434_v1 = vmul.f32 1.442695, %v429_v62  ;;  %v427_v2 = vmul.f32 0.6931472, %v602_v63 }
 0x188   : > { %v436_v3 = vmul.f32 1.442695, %v430_v0 }
 0x189   : > { %605 = vpow2.f32 %v434_v1  ;;  %v431_v4 = vmul.f32 0.33333334, %v427_v2 }
 0x18a   : > { %607 = vpow2.f32 %v436_v3 }
 0x18b   : > { %v438_v5 = vmul.f32 1.442695, %v431_v4 }
 0x18d   : > { %609 = vpow2.f32 %v438_v5 }
 0x192   : > { %v604_v6 = vpop.eup %603 }
 0x193   : > { %v444_v9 = vmul.f32 %v604_v6, %v440_v7 }
 0x195   : > { %v449_v16 = vsel %vm448_vm4, %v444_v9, 0.0 }
 0x196   : > { %v606_v11 = vpop.eup %605 }
 0x197   : > { %v608_v12 = vpop.eup %607  ;;  %v445_v13 = vmul.f32 %v606_v11, %v441_v8 }
 0x198   : > { %v446_v14 = vmul.f32 %v608_v12, %v442_v10 }
 0x199   : > { %v450_v17 = vsel %vm448_vm4, %v445_v13, 0.0 }
 0x19a   : > { %v610_v18 = vpop.eup %609  ;;  %v451_v19 = vadd.f32 %v450_v17, %v449_v16  ;;  %v452_v20 = vsel %vm448_vm4, %v446_v14, 0.0 }
 0x19b   : > { %v447_v21 = vmul.f32 %v610_v18, %v443_v15 }
 0x19c   : > { %v453_v22 = vadd.f32 %v452_v20, %v451_v19 }
 0x19d   : > { %v454_v23 = vsel %vm448_vm4, %v447_v21, 0.0 }
 0x19e   : > { %v455_v24 = vadd.f32 %v454_v23, %v453_v22 }
 0x1a0   : > { %v456_v25 = vrot.slane %v455_v24, 4 }
 0x1a2   : > { %v457_v26 = vadd.f32 %v456_v25, %v455_v24 }
 0x1a4   : > { %v458_v27 = vrot.slane %v457_v26, 2 }
 0x1a6   : > { %v459_v28 = vadd.f32 %v458_v27, %v457_v26 }
 0x1a8   : > { %v460_v29 = vrot.slane %v459_v28, 1 }
 0x1aa   : > { %v461_v31 = vadd.f32 %v460_v29, %v459_v28 }
 0x1ac   : > { %v463_v32 = vadd.f32 %v462_v30, %v461_v31 }
 0x1ae   : > { %v466_v33 = vsub.f32 0.0, %v463_v32  ;;  %465 = vst.msk [vmem:[%s243_s29] sm:$0x1] %vm464_vm5, %v463_v32 }
 0x1b0   : > { %v467_v34 = vmul.f32 1.442695, %v466_v33 }
 0x1b2   : > { %611 = vpow2.f32 %v467_v34 }
 0x1bf   : > { %v612_v35 = vpop.eup %611 }
 0x1c0   : > { %v469_v36 = vadd.f32 1.0, %v612_v35 }
 0x1c2   : > { %613 = vrcp.f32 %v469_v36 }
 0x1cf   : > { %v614_v37 = vpop.eup %613 }
 0x1d0   : > { %473 = vrot.lane.b32.xlu1 %v614_v37, %s641_s30 }
 0x242   : > { %v474_v38 = vpop.permute.xlu1 %473 }
 0x243   : > { %477 = vst.msk [vmem:[%s243_s29] sm:$0x1] %vm476_vm6, %v474_v38 }
 0x244 PF: > { %s15_s20 = sadd.s32 1, %s637_s20   ;;  %s750_s18 = smov %s633_s19 }
 0x245   : > { %p12_p5 = scmp.ge.s32.totalorder %s15_s20, 4   ;;  %s751_s19 = smov %s753_s21 }
 0x247   :  { %14 = sbr.rel (!%p12_p5) target bundleno = 2 (0x2), region = 78 }

</bundles_post_ra>
